<compile_context>
chip_gen: v7x
topology: tpu7x:2x2x1
jax: 0.10.0
libtpu: 0.0.40
codegen_flags: <defaults>
</compile_context>

<pallas_src>
import jax
import jax.numpy as jnp
from jax.experimental import pallas as pl
from jax.experimental.pallas import tpu as pltpu

# Brevitas globals the reference module relies on (not defined in the snippet).
ACT_BW = 4
WEIGHT_BW = 4

# TODO(synk): brevitas learns/calibrates activation scales; fixed deterministic
# scales are used here (max_val ~ 6 for signed/unsigned acts, [0, 15] for qout).
ACT_SCALE = 6.0 / (2.0 ** (ACT_BW - 1) - 1.0)   # signed int4 identity quant
RELU_SCALE = 6.0 / (2.0 ** ACT_BW - 1.0)        # unsigned int4 ReLU quant
QOUT_SCALE = 15.0 / (2.0 ** ACT_BW - 1.0)       # qout: min 0, max 15 -> scale 1.0

QIN_MIN = -(2.0 ** (ACT_BW - 1))      # -8  TODO(synk): narrow_range would use -7
QIN_MAX = 2.0 ** (ACT_BW - 1) - 1.0   # +7
QU_MAX = 2.0 ** ACT_BW - 1.0          # 15
QOUT_RESCALE = RELU_SCALE / QOUT_SCALE  # multiply (never divide) in the kernel

# Padded layer widths (sublane granularity 16 = bf16 packing): 31->32, 11->16, 3->16.
W1P, W2P, W3P = 32, 16, 16


def _round_up(n, m):
    return (n + m - 1) // m * m


def _is_v7x():
    """Best-effort generation check; only used to decide grid splitting."""
    try:
        return "v7" in jax.devices()[0].device_kind.lower()
    except Exception:  # pragma: no cover
        return False


def _make_kernel(w0, offs):
    """Kernel closure over static padded feature width + bias-pack offsets."""
    o_s0, o_t0 = offs["s0"], offs["t0"]
    o_d1, o_d2, o_d3 = offs["d1"], offs["d2"], offs["d3"]
    o_a4, o_d4 = offs["a4"], offs["d4"]

    def kernel(x_ref, bias_ref, a1_ref, a2_ref, a3_ref, o_ref):
        f32, bf16 = jnp.float32, jnp.bfloat16
        # x is stored bf16 (HBM traffic); all elementwise math is f32 (v5e-safe).
        x = x_ref[...].astype(f32)                                # (w0, tile_b)

        s0 = bias_ref[o_s0:o_s0 + w0, :]                          # (w0, 1)
        t0 = bias_ref[o_t0:o_t0 + w0, :]
        # bn0 + qinp folded: signed int4 codes (exact integers -> bf16-safe).
        c0 = jnp.clip(jnp.round(x * s0 + t0), QIN_MIN, QIN_MAX)

        def layer(c, a_ref, d):
            # Codes are small integers -> exact in bf16; native bf16 MXU path.
            h = jnp.dot(a_ref[...], c.astype(bf16),
                        preferred_element_type=f32) + d
            return jnp.clip(jnp.round(h), 0.0, QU_MAX)            # uint4 codes (f32)

        c1 = layer(c0, a1_ref, bias_ref[o_d1:o_d1 + W1P, :])      # (32, tile_b)
        c2 = layer(c1, a2_ref, bias_ref[o_d2:o_d2 + W2P, :])      # (16, tile_b)
        c3 = layer(c2, a3_ref, bias_ref[o_d3:o_d3 + W3P, :])      # (16, tile_b)

        # Layer 4 (output width 1): VPU multiply + sublane reduce instead of an
        # M=1 matmul; weights live in the f32 bias pack.
        a4 = bias_ref[o_a4:o_a4 + W3P, :]                         # (16, 1)
        h4 = jnp.sum(c3 * a4, axis=0, keepdims=True) \
            + bias_ref[o_d4:o_d4 + 1, :]                          # (1, tile_b)
        c4 = jnp.clip(jnp.round(h4), 0.0, QU_MAX)

        # qout: unsigned 4-bit quant restricted to [0, 15]. Values are exact
        # small integers * QOUT_SCALE -> bf16 store is lossless.
        out = jnp.clip(jnp.round(c4 * QOUT_RESCALE), 0.0, QU_MAX) * QOUT_SCALE
        o_ref[...] = out.astype(o_ref.dtype)

    return kernel


def quantnet_forward(x, folded, *, tile_b=16384):
    """Fused QuantNet_opt forward. x: (B, n_features) float array -> (B, 1) f32."""
    B, F = x.shape
    w0 = folded["w0"]
    offs = folded["offsets"]

    # Lane (batch) tiling: big tiles to amortize per-step overhead; split into
    # >= 2 tiles only on v7x (2 TensorCores share the "parallel" grid axis).
    b_ceil = _round_up(max(B, 1), 128)
    tile_req = max(128, min(_round_up(int(tile_b), 128), b_ceil))
    num_tiles = pl.cdiv(b_ceil, tile_req)
    if _is_v7x():
        num_tiles = max(num_tiles, min(2, b_ceil // 128))
    tile = _round_up(pl.cdiv(b_ceil, num_tiles), 128)
    b_pad = num_tiles * tile

    # Feature-major, batch-on-lanes bf16 input stream; explicit zero padding so
    # the last block never DMAs undefined HBM past x.
    xt = jnp.pad(x.astype(jnp.bfloat16).T, ((0, w0 - F), (0, b_pad - B)))

    bias, a1, a2, a3 = folded["bias"], folded["a1"], folded["a2"], folded["a3"]
    kernel = _make_kernel(w0, offs)

    in_specs = [
        pl.BlockSpec((w0, tile), lambda i: (0, i)),
        pl.BlockSpec(bias.shape, lambda i: (0, 0)),
        pl.BlockSpec(a1.shape, lambda i: (0, 0)),
        pl.BlockSpec(a2.shape, lambda i: (0, 0)),
        pl.BlockSpec(a3.shape, lambda i: (0, 0)),
    ]
    out_specs = pl.BlockSpec((1, tile), lambda i: (0, i))

    param_bytes = sum(int(p.size) * p.dtype.itemsize for p in (bias, a1, a2, a3))
    flops = 2 * b_pad * (w0 * W1P + W1P * W2P + W2P * W3P + W3P)
    bytes_accessed = b_pad * w0 * 2 + b_pad * 2 + param_bytes
    cost = pl.CostEstimate(flops=flops, transcendentals=0,
                           bytes_accessed=bytes_accessed)

    out = pl.pallas_call(
        kernel,
        out_shape=jax.ShapeDtypeStruct((1, b_pad), jnp.bfloat16),
        grid_spec=pltpu.PrefetchScalarGridSpec(
            num_scalar_prefetch=0,
            grid=(num_tiles,),
            in_specs=in_specs,
            out_specs=out_specs,
        ),
        compiler_params=pltpu.CompilerParams(
            dimension_semantics=("parallel",)),
        cost_estimate=cost,
    )(xt, bias, a1, a2, a3)

    return out[0, :B].astype(jnp.float32).reshape(B, 1)


def _fake_quant_weight(w, bw=WEIGHT_BW):
    """Symmetric per-tensor weight fake-quantization (brevitas-style)."""
    qmax = 2.0 ** (bw - 1) - 1.0
    s = jnp.maximum(jnp.max(jnp.abs(w)), 1e-8) / qmax
    return jnp.clip(jnp.round(w / s), -qmax, qmax) * s


def init_raw_params(key, n_features):
    """Random inference-mode parameters mimicking the PyTorch module."""
    dims = [n_features, 31, 11, 3, 1]
    keys = iter(jax.random.split(key, 64))

    def bn(c):
        return dict(
            gamma=1.0 + 0.1 * jax.random.normal(next(keys), (c,), jnp.float32),
            beta=0.1 * jax.random.normal(next(keys), (c,), jnp.float32),
            mean=0.1 * jax.random.normal(next(keys), (c,), jnp.float32),
            var=jnp.abs(jax.random.normal(next(keys), (c,), jnp.float32)) + 0.5,
        )

    raw = {"bn0": bn(dims[0])}
    for li in range(1, 5):
        fan_in, fan_out = dims[li - 1], dims[li]
        bound = 1.0 / float(fan_in) ** 0.5
        raw[f"fc{li}"] = dict(
            w=jax.random.uniform(next(keys), (fan_out, fan_in), jnp.float32,
                                 minval=-bound, maxval=bound),
            b=jax.random.uniform(next(keys), (fan_out,), jnp.float32,
                                 minval=-bound, maxval=bound),
        )
        raw[f"bn{li}"] = bn(fan_out)
    return raw


def fold_params(raw, eps=1e-5):
    """Fold eval-mode BN and all fake-quant scales into per-layer (A_i, d_i).

    Stored in the transposed (feature-major) orientation the kernel uses:
      a{1..3}: (out_pad, in_pad) bf16 weights; one f32 (N,1) "bias" pack holding
      s0, t0, d1..d3, the layer-4 weight column and d4 at 8-aligned offsets.
    The kernel then only computes clip(round(A_i @ C + d_i)) per layer, which
    reproduces bn0 -> qinp -> [fc -> bn -> qrelu] x4 -> qout exactly (up to
    float associativity / bf16 weight rounding).
    """
    f32 = jnp.float32

    def bn_fold(d):
        s = d["gamma"] / jnp.sqrt(d["var"] + eps)
        return s, d["beta"] - d["mean"] * s

    F = int(raw["bn0"]["gamma"].shape[0])
    w0 = _round_up(F, 16)
    wpad = {0: w0, 1: W1P, 2: W2P, 3: W3P, 4: 1}

    s0, t0 = bn_fold(raw["bn0"])
    s0 = jnp.pad(s0 / ACT_SCALE, (0, w0 - F))
    t0 = jnp.pad(t0 / ACT_SCALE, (0, w0 - F))

    a_mats, d_vecs = {}, {}
    prev_scale = ACT_SCALE            # dequant scale of the incoming codes
    for li in range(1, 5):
        w = _fake_quant_weight(raw[f"fc{li}"]["w"])            # (out, in)
        b = raw[f"fc{li}"]["b"]
        s, t = bn_fold(raw[f"bn{li}"])
        A = w * (prev_scale * s / RELU_SCALE)[:, None]         # (out, in)
        d = (b * s + t) / RELU_SCALE                           # (out,)
        out_p, in_p = wpad[li], wpad[li - 1]
        a_mats[li] = jnp.pad(A, ((0, out_p - A.shape[0]), (0, in_p - A.shape[1])))
        d_vecs[li] = jnp.pad(d, (0, out_p - d.shape[0]))
        prev_scale = RELU_SCALE

    # Single f32 (N, 1) scale/bias pack with 8-aligned static offsets.
    offs, segs, cursor = {}, [], 0

    def push(name, v):
        nonlocal cursor
        offs[name] = cursor
        segs.append(v.astype(f32))
        cursor += int(v.shape[0])

    push("s0", s0)
    push("t0", t0)
    push("d1", d_vecs[1])
    push("d2", d_vecs[2])
    push("d3", d_vecs[3])
    push("a4", a_mats[4][0, :])                 # layer-4 weights as a column
    push("d4", jnp.pad(d_vecs[4], (0, 7)))      # pad to 8 rows

    return {
        "a1": a_mats[1].astype(jnp.bfloat16),   # (32, w0)
        "a2": a_mats[2].astype(jnp.bfloat16),   # (16, 32)
        "a3": a_mats[3].astype(jnp.bfloat16),   # (16, 16)
        "bias": jnp.concatenate(segs)[:, None],  # (2*w0 + 88, 1) f32
        "offsets": offs,
        "w0": w0,
    }


def reference_forward(x, folded):
    """Plain-JAX reference using the same folded parameters as the kernel."""
    f32 = jnp.float32
    hp = jax.lax.Precision.HIGHEST
    B, F = x.shape
    w0 = folded["w0"]
    offs = folded["offsets"]
    bias = folded["bias"][:, 0]

    # Note: input is cast to bf16 exactly like the kernel's HBM stream.
    xp = jnp.pad(x.astype(jnp.bfloat16).astype(f32), ((0, 0), (0, w0 - F)))
    s0 = bias[offs["s0"]:offs["s0"] + w0]
    t0 = bias[offs["t0"]:offs["t0"] + w0]
    c = jnp.clip(jnp.round(xp * s0 + t0), QIN_MIN, QIN_MAX)

    for li, wo in ((1, W1P), (2, W2P), (3, W3P)):
        A = folded[f"a{li}"].astype(f32)        # same bf16-rounded weights
        d = bias[offs[f"d{li}"]:offs[f"d{li}"] + wo]
        h = jnp.dot(c, A.T, precision=hp) + d
        c = jnp.clip(jnp.round(h), 0.0, QU_MAX)

    a4 = bias[offs["a4"]:offs["a4"] + W3P]
    d4 = bias[offs["d4"]]
    h4 = jnp.dot(c, a4[:, None], precision=hp) + d4
    c4 = jnp.clip(jnp.round(h4), 0.0, QU_MAX)
    return jnp.clip(jnp.round(c4 * QOUT_RESCALE), 0.0, QU_MAX) * QOUT_SCALE


if __name__ == "__main__":
    n_features = 16
    batch = 256

    key = jax.random.PRNGKey(0)
    k_x, k_p = jax.random.split(key)
    x = jax.random.normal(k_x, (batch, n_features), jnp.float32)

    raw = init_raw_params(k_p, n_features)
    folded = fold_params(raw)

    out = quantnet_forward(x, folded)
    out = jax.block_until_ready(out)
    assert out.shape == (batch, 1), out.shape
    assert bool(jnp.all(jnp.isfinite(out)))
    assert float(jnp.min(out)) >= 0.0 and float(jnp.max(out)) <= QU_MAX * QOUT_SCALE

    ref = reference_forward(x, folded)
    max_diff = float(jnp.max(jnp.abs(out - ref)))
    # Allow at most one quant code of drift from matmul accumulation-order diffs.
    assert max_diff <= 2.0, f"kernel vs reference max diff {max_diff}"

    print("KERNEL_OK")
</pallas_src>

<mosaic_0001>
module attributes {stable_mosaic.version = 11 : i64} {
  func.func @kernel(%arg0: i32, %arg1: memref<16x256xbf16, #tpu.memory_space<vmem>>, %arg2: memref<120x1xf32, #tpu.memory_space<vmem>>, %arg3: memref<32x16xbf16, #tpu.memory_space<vmem>>, %arg4: memref<16x32xbf16, #tpu.memory_space<vmem>>, %arg5: memref<16x16xbf16, #tpu.memory_space<vmem>>, %arg6: memref<1x256xbf16, #tpu.memory_space<vmem>>) attributes {dimension_semantics = [#tpu.dimension_semantics<parallel>], iteration_bounds = array<i64: 1>, scalar_prefetch = 0 : i64, scratch_operands = 0 : i64, tpu.core_type = #tpu.core_type<tc>, window_params = [{transform_indices = @transform_0, window_bounds = array<i64: 16, 256>}, {pipeline_mode = #tpu.pipeline_mode<synchronous>, transform_indices = @transform_1, window_bounds = array<i64: 120, 1>}, {pipeline_mode = #tpu.pipeline_mode<synchronous>, transform_indices = @transform_2, window_bounds = array<i64: 32, 16>}, {pipeline_mode = #tpu.pipeline_mode<synchronous>, transform_indices = @transform_3, window_bounds = array<i64: 16, 32>}, {pipeline_mode = #tpu.pipeline_mode<synchronous>, transform_indices = @transform_4, window_bounds = array<i64: 16, 16>}, {transform_indices = @transform_5, window_bounds = array<i64: 1, 256>}]} {
    %c0 = arith.constant 0 : index
    %c0_0 = arith.constant 0 : index
    %0 = vector.load %arg1[%c0, %c0_0] : memref<16x256xbf16, #tpu.memory_space<vmem>>, vector<16x256xbf16>
    %1 = arith.extf %0 : vector<16x256xbf16> to vector<16x256xf32>
    %c0_1 = arith.constant 0 : index
    %c0_2 = arith.constant 0 : index
    %2 = vector.load %arg2[%c0_1, %c0_2] : memref<120x1xf32, #tpu.memory_space<vmem>>, vector<16x1xf32>
    %c16 = arith.constant 16 : index
    %c0_3 = arith.constant 0 : index
    %3 = vector.load %arg2[%c16, %c0_3] : memref<120x1xf32, #tpu.memory_space<vmem>>, vector<16x1xf32>
    %4 = vector.broadcast %2 : vector<16x1xf32> to vector<16x256xf32>
    %5 = arith.mulf %1, %4 : vector<16x256xf32>
    %6 = vector.broadcast %3 : vector<16x1xf32> to vector<16x256xf32>
    %7 = arith.addf %5, %6 : vector<16x256xf32>
    %8 = math.roundeven %7 : vector<16x256xf32>
    %cst = arith.constant -8.000000e+00 : f32
    %cst_4 = arith.constant 7.000000e+00 : f32
    %9 = vector.broadcast %cst : f32 to vector<16x256xf32>
    %10 = arith.maximumf %9, %8 : vector<16x256xf32>
    %11 = vector.broadcast %cst_4 : f32 to vector<16x256xf32>
    %12 = arith.minimumf %11, %10 : vector<16x256xf32>
    %c32 = arith.constant 32 : index
    %c0_5 = arith.constant 0 : index
    %13 = vector.load %arg2[%c32, %c0_5] : memref<120x1xf32, #tpu.memory_space<vmem>>, vector<32x1xf32>
    %c0_6 = arith.constant 0 : index
    %c0_7 = arith.constant 0 : index
    %14 = vector.load %arg3[%c0_6, %c0_7] : memref<32x16xbf16, #tpu.memory_space<vmem>>, vector<32x16xbf16>
    %15 = arith.truncf %12 : vector<16x256xf32> to vector<16x256xbf16>
    %cst_8 = arith.constant dense<0.000000e+00> : vector<32x256xf32>
    %16 = tpu.matmul %14, %15, %cst_8 {dimension_numbers = #tpu.dot_dimension_numbers<[1], [0], [0], [1], [0, 0, 1, 1], [], []>} : vector<32x16xbf16>, vector<16x256xbf16>, vector<32x256xf32> -> vector<32x256xf32>
    %17 = vector.broadcast %13 : vector<32x1xf32> to vector<32x256xf32>
    %18 = arith.addf %16, %17 : vector<32x256xf32>
    %19 = math.roundeven %18 : vector<32x256xf32>
    %cst_9 = arith.constant 0.000000e+00 : f32
    %cst_10 = arith.constant 1.500000e+01 : f32
    %20 = vector.broadcast %cst_9 : f32 to vector<32x256xf32>
    %21 = arith.maximumf %20, %19 : vector<32x256xf32>
    %22 = vector.broadcast %cst_10 : f32 to vector<32x256xf32>
    %23 = arith.minimumf %22, %21 : vector<32x256xf32>
    %c64 = arith.constant 64 : index
    %c0_11 = arith.constant 0 : index
    %24 = vector.load %arg2[%c64, %c0_11] : memref<120x1xf32, #tpu.memory_space<vmem>>, vector<16x1xf32>
    %c0_12 = arith.constant 0 : index
    %c0_13 = arith.constant 0 : index
    %25 = vector.load %arg4[%c0_12, %c0_13] : memref<16x32xbf16, #tpu.memory_space<vmem>>, vector<16x32xbf16>
    %26 = arith.truncf %23 : vector<32x256xf32> to vector<32x256xbf16>
    %cst_14 = arith.constant dense<0.000000e+00> : vector<16x256xf32>
    %27 = tpu.matmul %25, %26, %cst_14 {dimension_numbers = #tpu.dot_dimension_numbers<[1], [0], [0], [1], [0, 0, 1, 1], [], []>} : vector<16x32xbf16>, vector<32x256xbf16>, vector<16x256xf32> -> vector<16x256xf32>
    %28 = vector.broadcast %24 : vector<16x1xf32> to vector<16x256xf32>
    %29 = arith.addf %27, %28 : vector<16x256xf32>
    %30 = math.roundeven %29 : vector<16x256xf32>
    %cst_15 = arith.constant 0.000000e+00 : f32
    %cst_16 = arith.constant 1.500000e+01 : f32
    %31 = vector.broadcast %cst_15 : f32 to vector<16x256xf32>
    %32 = arith.maximumf %31, %30 : vector<16x256xf32>
    %33 = vector.broadcast %cst_16 : f32 to vector<16x256xf32>
    %34 = arith.minimumf %33, %32 : vector<16x256xf32>
    %c80 = arith.constant 80 : index
    %c0_17 = arith.constant 0 : index
    %35 = vector.load %arg2[%c80, %c0_17] : memref<120x1xf32, #tpu.memory_space<vmem>>, vector<16x1xf32>
    %c0_18 = arith.constant 0 : index
    %c0_19 = arith.constant 0 : index
    %36 = vector.load %arg5[%c0_18, %c0_19] : memref<16x16xbf16, #tpu.memory_space<vmem>>, vector<16x16xbf16>
    %37 = arith.truncf %34 : vector<16x256xf32> to vector<16x256xbf16>
    %cst_20 = arith.constant dense<0.000000e+00> : vector<16x256xf32>
    %38 = tpu.matmul %36, %37, %cst_20 {dimension_numbers = #tpu.dot_dimension_numbers<[1], [0], [0], [1], [0, 0, 1, 1], [], []>} : vector<16x16xbf16>, vector<16x256xbf16>, vector<16x256xf32> -> vector<16x256xf32>
    %39 = vector.broadcast %35 : vector<16x1xf32> to vector<16x256xf32>
    %40 = arith.addf %38, %39 : vector<16x256xf32>
    %41 = math.roundeven %40 : vector<16x256xf32>
    %cst_21 = arith.constant 0.000000e+00 : f32
    %cst_22 = arith.constant 1.500000e+01 : f32
    %42 = vector.broadcast %cst_21 : f32 to vector<16x256xf32>
    %43 = arith.maximumf %42, %41 : vector<16x256xf32>
    %44 = vector.broadcast %cst_22 : f32 to vector<16x256xf32>
    %45 = arith.minimumf %44, %43 : vector<16x256xf32>
    %c96 = arith.constant 96 : index
    %c0_23 = arith.constant 0 : index
    %46 = vector.load %arg2[%c96, %c0_23] : memref<120x1xf32, #tpu.memory_space<vmem>>, vector<16x1xf32>
    %47 = vector.broadcast %46 : vector<16x1xf32> to vector<16x256xf32>
    %48 = arith.mulf %45, %47 : vector<16x256xf32>
    %cst_24 = arith.constant dense<0.000000e+00> : vector<256xf32>
    %49 = vector.multi_reduction <add>, %48, %cst_24 [0] : vector<16x256xf32> to vector<256xf32>
    %50 = vector.shape_cast %49 : vector<256xf32> to vector<1x256xf32>
    %c112 = arith.constant 112 : index
    %c0_25 = arith.constant 0 : index
    %51 = vector.load %arg2[%c112, %c0_25] : memref<120x1xf32, #tpu.memory_space<vmem>>, vector<1x1xf32>
    %52 = vector.broadcast %51 : vector<1x1xf32> to vector<1x256xf32>
    %53 = arith.addf %50, %52 : vector<1x256xf32>
    %54 = math.roundeven %53 : vector<1x256xf32>
    %cst_26 = arith.constant 0.000000e+00 : f32
    %cst_27 = arith.constant 1.500000e+01 : f32
    %55 = vector.broadcast %cst_26 : f32 to vector<1x256xf32>
    %56 = arith.maximumf %55, %54 : vector<1x256xf32>
    %57 = vector.broadcast %cst_27 : f32 to vector<1x256xf32>
    %58 = arith.minimumf %57, %56 : vector<1x256xf32>
    %cst_28 = arith.constant 4.000000e-01 : f32
    %59 = vector.broadcast %cst_28 : f32 to vector<1x256xf32>
    %60 = arith.mulf %58, %59 : vector<1x256xf32>
    %61 = math.roundeven %60 : vector<1x256xf32>
    %cst_29 = arith.constant 0.000000e+00 : f32
    %cst_30 = arith.constant 1.500000e+01 : f32
    %62 = vector.broadcast %cst_29 : f32 to vector<1x256xf32>
    %63 = arith.maximumf %62, %61 : vector<1x256xf32>
    %64 = vector.broadcast %cst_30 : f32 to vector<1x256xf32>
    %65 = arith.minimumf %64, %63 : vector<1x256xf32>
    %cst_31 = arith.constant 1.000000e+00 : f32
    %66 = vector.broadcast %cst_31 : f32 to vector<1x256xf32>
    %67 = arith.mulf %65, %66 : vector<1x256xf32>
    %68 = arith.truncf %67 : vector<1x256xf32> to vector<1x256xbf16>
    %c0_32 = arith.constant 0 : index
    %c0_33 = arith.constant 0 : index
    %69 = vector.load %arg6[%c0_32, %c0_33] : memref<1x256xbf16, #tpu.memory_space<vmem>>, vector<1x256xbf16>
    tpu.vector_store %arg6[%c0_32, %c0_33], %68 {strides = array<i32>} : memref<1x256xbf16, #tpu.memory_space<vmem>>, vector<1x256xbf16>,
    return
  }
  func.func @transform_0(%arg0: i32) -> (i32, i32) {
    %c0_i32 = arith.constant 0 : i32
    %c0_i32_0 = arith.constant 0 : i32
    return %c0_i32, %arg0 : i32, i32
  }
  func.func @transform_1(%arg0: i32) -> (i32, i32) {
    %c0_i32 = arith.constant 0 : i32
    %c0_i32_0 = arith.constant 0 : i32
    %c0_i32_1 = arith.constant 0 : i32
    return %c0_i32, %c0_i32_0 : i32, i32
  }
  func.func @transform_2(%arg0: i32) -> (i32, i32) {
    %c0_i32 = arith.constant 0 : i32
    %c0_i32_0 = arith.constant 0 : i32
    %c0_i32_1 = arith.constant 0 : i32
    return %c0_i32, %c0_i32_0 : i32, i32
  }
  func.func @transform_3(%arg0: i32) -> (i32, i32) {
    %c0_i32 = arith.constant 0 : i32
    %c0_i32_0 = arith.constant 0 : i32
    %c0_i32_1 = arith.constant 0 : i32
    return %c0_i32, %c0_i32_0 : i32, i32
  }
  func.func @transform_4(%arg0: i32) -> (i32, i32) {
    %c0_i32 = arith.constant 0 : i32
    %c0_i32_0 = arith.constant 0 : i32
    %c0_i32_1 = arith.constant 0 : i32
    return %c0_i32, %c0_i32_0 : i32, i32
  }
  func.func @transform_5(%arg0: i32) -> (i32, i32) {
    %c0_i32 = arith.constant 0 : i32
    %c0_i32_0 = arith.constant 0 : i32
    return %c0_i32, %arg0 : i32, i32
  }
}

</mosaic_0001>

<bundles_post_ra>
// kernel: tpu_custom_call.1
= control target key start
LH: loop header
LB: loop body
LE: loop exit
PB: predicated region body
PF: predicated region fallthrough
CT: control target
= control target key end

     0   :  { %v519_v2 = vmov 0   ;;  %s636_s0 = inlined_call_operand.vmem [shape: bf16[16,256], index: 0, kind: input, shape index: {}]   ;;  %s637_s1 = inlined_call_operand.vmem [shape: f32[120,1], index: 1, kind: input, shape index: {}]   ;;  %s638_s2 = inlined_call_operand.vmem [shape: bf16[32,16], index: 2, kind: input, shape index: {}]   ;;  %s639_s3 = inlined_call_operand.vmem [shape: bf16[16,32], index: 3, kind: input, shape index: {}]   ;;  %s640_s4 = inlined_call_operand.vmem [shape: bf16[16,16], index: 4, kind: input, shape index: {}]   ;;  %s641_s5 = inlined_call_operand.hbm [shape: bf16[1,256], index: 5, kind: output, shape index: {}]  }
   0x1   :  { %v30_v0 = vld [vmem:[%s637_s1 + $0x10] sm:$0xff]  ;;  %v28_v1 = vld [vmem:[%s637_s1] sm:$0xff]  ;;  %490 = vset.pattern.permute.xlu1 %v519_v2  ;;  %489 = vset.pattern.permute.xlu0 %v519_v2  ;;  %v31_v3 = vld [vmem:[%s637_s1 + $0x18] sm:$0xff] }
   0x2   :  { %48 = vperm.xlu1 %490, %v30_v0   ;;  %34 = vperm.xlu0 %489, %v28_v1   ;;  %v29_v4 = vld [vmem:[%s637_s1 + $0x8] sm:$0xff]  ;;  %v72_v6 = vld [vmem:[%s637_s1 + $0x20] sm:$0xff] }
   0x3   :  { %151 = vmatprep.mubr.bf16.mxu0 %v519_v2  ;;  %255 = vmatprep.mubr.bf16.mxu1 %v519_v2  ;;  %v73_v5 = vld [vmem:[%s637_s1 + $0x28] sm:$0xff] }
   0x6   :  { %53 = vperm.xlu1 %490, %v31_v3   ;;  %39 = vperm.xlu0 %489, %v29_v4  }
   0x7   :  { %10 = vsyncpa [#allocation3], 0  ;;  %v75_v7 = vld [vmem:[%s637_s1 + $0x38] sm:$0xff]  ;;  %v74_v8 = vld [vmem:[%s637_s1 + $0x30] sm:$0xff]  ;;  %vm112_vm0 = vcmask 130048   ;;  %vm219_vm1 = vcmask 261120  }
   0x8   :  { %v197_v9 = vld [vmem:[%s637_s1 + $0x48] sm:$0xff]  ;;  %v196_v10 = vld [vmem:[%s637_s1 + $0x40] sm:$0xff]  ;;  %v279_v11 = vld [vmem:[%s637_s1 + $0x58] sm:$0xff]  ;;  %vm429_vm2 = vcmask 1040384   ;;  %vm430_vm3 = vsmask.f32 256 }
   0x9   :  { %v278_v12 = vld [vmem:[%s637_s1 + $0x50] sm:$0xff]  ;;  %v358_v13 = vld [vmem:[%s637_s1 + $0x68] sm:$0xff]  ;;  %v357_v14 = vld [vmem:[%s637_s1 + $0x60] sm:$0xff]  ;;  %vm432_vm4 = vcmask 1041409   ;;  %vm433_vm5 = vsmask.f32 1280 }
   0xa   :  { %89 = vperm.xlu1 %490, %v73_v5   ;;  %84 = vperm.xlu0 %489, %v72_v6   ;;  %v387_v15 = vld [vmem:[%s637_s1 + $0x70] sm:$0x1]  ;;  %v22_v16 = vld [vmem:[%s636_s0] sm:$0xff]  ;;  %v23_v19 = vld [vmem:[%s636_s0 + $0x8] sm:$0xff] }
   0xb   :  { %v24_v17 = vunpack.c.l.bf16 %v22_v16  ;;  %v25_v18 = vunpack.c.h.bf16 %v22_v16  ;;  %v26_v24 = vunpack.c.l.bf16 %v23_v19  ;;  %v27_v25 = vunpack.c.h.bf16 %v23_v19  ;;  %v491_v48 = vld [vmem:[%s638_s2] sm:$0xff]   ;;  %v492_v49 = vld [vmem:[%s638_s2 + $0x8] sm:$0xff]   ;;  %vm431_vm6 = vmand %vm429_vm2, %vm430_vm3 }
   0xc   :  { %vm434_vm7 = vmand %vm432_vm4, %vm433_vm5 }
   0xd   :  { %vm435_vm8 = vmor %vm434_vm7, %vm431_vm6 }
   0xe   :  { %99 = vperm.xlu1 %490, %v75_v7   ;;  %94 = vperm.xlu0 %489, %v74_v8  }
  0x12   :  { %211 = vperm.xlu1 %490, %v197_v9   ;;  %206 = vperm.xlu0 %489, %v196_v10  }
  0x16   :  { %291 = vperm.xlu1 %490, %v279_v11   ;;  %286 = vperm.xlu0 %489, %v278_v12  }
  0x1a   :  { %366 = vperm.xlu1 %490, %v358_v13   ;;  %361 = vperm.xlu0 %489, %v357_v14  }
  0x1e   :  { %390 = vperm.xlu0 %489, %v387_v15  }
  0x81   :  { %v49_v20 = vpop.permute.xlu1 %48  ;;  %v35_v21 = vpop.permute.xlu0 %34 }
  0x82   :  { %v42_v22 = vmul.f32 %v35_v21, %v24_v17  ;;  %v43_v23 = vmul.f32 %v35_v21, %v25_v18 }
  0x84   :  { %v56_v26 = vadd.f32 %v49_v20, %v42_v22  ;;  %v57_v27 = vadd.f32 %v49_v20, %v43_v23 }
  0x85   :  { %v40_v28 = vpop.permute.xlu0 %39  ;;  %v54_v33 = vpop.permute.xlu1 %53 }
  0x86   :  { %v462_v29 = vround.rtne.f32 %v56_v26  ;;  %v44_v30 = vmul.f32 %v40_v28, %v26_v24  ;;  %v45_v31 = vmul.f32 %v40_v28, %v27_v25  ;;  %v463_v32 = vround.rtne.f32 %v57_v27 }
  0x88   :  { %v58_v34 = vadd.f32 %v54_v33, %v44_v30  ;;  %v59_v35 = vadd.f32 %v54_v33, %v45_v31  ;;  %v65_v38 = vmax.f32 %v463_v32, -8.0  ;;  %v64_v39 = vmax.f32 %v462_v29, -8.0 }
  0x89   :  { %v85_v50 = vpop.permute.xlu0 %84  ;;  %v90_v54 = vpop.permute.xlu1 %89 }
  0x8a   :  { %v464_v36 = vround.rtne.f32 %v58_v34  ;;  %v465_v37 = vround.rtne.f32 %v59_v35  ;;  %v69_v42 = vmin.f32 %v65_v38, 7.0  ;;  %v68_v44 = vmin.f32 %v64_v39, 7.0  ;;  %v493_v35 = vld [vmem:[%s639_s3] sm:$0xff]  }
  0x8c   :  { %v67_v40 = vmax.f32 %v465_v37, -8.0  ;;  %v66_v41 = vmax.f32 %v464_v36, -8.0 }
  0x8d   :  { %v95_v4 = vpop.permute.xlu0 %94  ;;  %v100_v11 = vpop.permute.xlu1 %99 }
  0x8e   :  { %v71_v43 = vmin.f32 %v67_v40, 7.0  ;;  %v70_v45 = vmin.f32 %v66_v41, 7.0 }
  0x90   :  { %v81_v46 = vpack.c.bf16 %v71_v43, %v69_v42  ;;  %v80_v47 = vpack.c.bf16 %v70_v45, %v68_v44 }
  0x91   :  { %v207_v36 = vpop.permute.xlu0 %206  ;;  %v212_v40 = vpop.permute.xlu1 %211 }
  0x92   :  { %119 = vmatprep.subr.bf16.mxu0 %v81_v46 }
  0x93   :  { %120 = vmatpush1.bf16.msra.mxu0 %v80_v47 }
  0x96   :  { %455 = vmatmul.mubr.msk.bf16.vlgmr.msra.gmra.mrb[0].mxu0 %vm112_vm0, %v491_v48 }
  0x97   :  { %161 = vmatprep.mubr.bf16.mxu0 %v519_v2 }
  0x9e   :  { %456 = vmatmul.mubr.msk.bf16.gmra.mrb[4].mxu0 %vm112_vm0, %v492_v49 }
 0x169   :  { %v153_v51 = vpop.f32.mrb[0].mxu0 }
 0x16a   :  { %v154_v52 = vadd.f32 %v153_v51, %v85_v50  ;;  %v155_v53 = vpop.f32.mrb[1].mxu0 }
 0x16b   :  { %v156_v55 = vadd.f32 %v155_v53, %v85_v50  ;;  %v157_v56 = vpop.f32.mrb[2].mxu0 }
 0x16c   :  { %v466_v57 = vround.rtne.f32 %v154_v52  ;;  %v158_v58 = vadd.f32 %v157_v56, %v90_v54  ;;  %v159_v59 = vpop.f32.mrb[3].mxu0 }
 0x16d   :  { %v467_v60 = vround.rtne.f32 %v156_v55  ;;  %v160_v61 = vadd.f32 %v159_v59, %v90_v54  ;;  %v494_v59 = vld [vmem:[%s640_s4] sm:$0xff]   ;;  %s521_s4 = smov [#allocation2]  }
 0x16e   :  { %v180_v62 = vmax.f32 %v466_v57, 0.0  ;;  %v468_v63 = vround.rtne.f32 %v158_v58  ;;  %s445_s6 = sshll.u32 %s521_s4, 4  ;;  %s446_s6 = int_to_ptr.vmem [resolvable:$true] %s445_s6 }
 0x16f   :  { %v181_v0 = vmax.f32 %v467_v60, 0.0  ;;  %v469_v1 = vround.rtne.f32 %v160_v61  ;;  %v287_v60 = vpop.permute.xlu0 %286  ;;  %s495_s7 = scalar_lea.vmem %s446_s6, 32  ;;  %p500_p1 = scmp.lt.s32.totalorder %s446_s6, %s446_s6 }
 0x170   :  { %v182_v3 = vmax.f32 %v468_v63, 0.0  ;;  %v188_v7 = vmin.f32 %v180_v62, 15.0  ;;  %p496_p0 = scmp.ne.s32.totalorder %s446_s6, %s495_s7  ;;  %p501_p2 = scmp.lt.s32.totalorder %s495_s7, %s495_s7 }
 0x171   :  { %v183_v5 = vmax.f32 %v469_v1, 0.0  ;;  %v163_v6 = vpop.f32.mrb[4].mxu0  ;;  %v189_v14 = vmin.f32 %v181_v0, 15.0  ;;  %v292_v0 = vpop.permute.xlu1 %291 }
 0x172   :  { %v190_v8 = vmin.f32 %v182_v3, 15.0  ;;  %v164_v9 = vadd.f32 %v163_v6, %v95_v4  ;;  %v165_v10 = vpop.f32.mrb[5].mxu0  ;;  %p502_p3 = por %p501_p2, %p500_p1 }
 0x173   :  { %v166_v12 = vadd.f32 %v165_v10, %v95_v4  ;;  %v167_v13 = vpop.f32.mrb[6].mxu0  ;;  %v191_v15 = vmin.f32 %v183_v5, 15.0 }
 0x174   :  { %v470_v16 = vround.rtne.f32 %v164_v9  ;;  %v168_v17 = vadd.f32 %v167_v13, %v100_v11  ;;  %v169_v18 = vpop.f32.mrb[7].mxu0  ;;  %v200_v19 = vpack.c.bf16 %v190_v8, %v188_v7  ;;  %p503_p4 = pnand %p502_p3, %p496_p0 }
 0x175   :  { %v471_v20 = vround.rtne.f32 %v166_v12  ;;  %v170_v21 = vadd.f32 %v169_v18, %v100_v11  ;;  %v201_v22 = vpack.c.bf16 %v191_v15, %v189_v14  ;;  %v367_v18 = vpop.permute.xlu1 %366 }
 0x176   :  { %v184_v23 = vmax.f32 %v470_v16, 0.0  ;;  %v472_v24 = vround.rtne.f32 %v168_v17 }
 0x177   :  { %v185_v25 = vmax.f32 %v471_v20, 0.0  ;;  %v473_v26 = vround.rtne.f32 %v170_v21  ;;  %223 = vmatprep.subr.bf16.mxu1 %v201_v22 }
 0x178   :  { %v186_v27 = vmax.f32 %v472_v24, 0.0  ;;  %224 = vmatpush1.bf16.msra.mxu1 %v200_v19  ;;  %v192_v29 = vmin.f32 %v184_v23, 15.0  ;;  %v362_v19 = vpop.permute.xlu0 %361 }
 0x179   :  { %v187_v28 = vmax.f32 %v473_v26, 0.0  ;;  %v193_v31 = vmin.f32 %v185_v25, 15.0 }
 0x17a   :  { %v194_v30 = vmin.f32 %v186_v27, 15.0 }
 0x17b   :  { %v195_v32 = vmin.f32 %v187_v28, 15.0 }
 0x17c   :  { %v202_v33 = vpack.c.bf16 %v194_v30, %v192_v29 }
 0x17d   :  { %v203_v34 = vpack.c.bf16 %v195_v32, %v193_v31 }
 0x17f   :  { %225 = vmatprep.subr.bf16.mxu1 %v203_v34 }
 0x180   :  { %226 = vmatpush1.bf16.msra.mxu1 %v202_v33 }
 0x183   :  { %458 = vmatmul.mubr.msk.bf16.vlgmr.msra.gmra.mrb[0].mxu1 %vm219_vm1, %v493_v35 }
 0x184   :  { %334 = vmatprep.mubr.bf16.mxu1 %v519_v2 }
 0x256   :  { %v257_v37 = vpop.f32.mrb[0].mxu1 }
 0x257   :  { %v258_v38 = vadd.f32 %v257_v37, %v207_v36  ;;  %v259_v39 = vpop.f32.mrb[1].mxu1 }
 0x258   :  { %v260_v41 = vadd.f32 %v259_v39, %v207_v36  ;;  %v261_v42 = vpop.f32.mrb[2].mxu1 }
 0x259   :  { %v474_v43 = vround.rtne.f32 %v258_v38  ;;  %v262_v44 = vadd.f32 %v261_v42, %v212_v40  ;;  %v263_v45 = vpop.f32.mrb[3].mxu1  ;;  %v391_v38 = vpop.permute.xlu0 %390 }
 0x25a   :  { %v475_v46 = vround.rtne.f32 %v260_v41  ;;  %v264_v47 = vadd.f32 %v263_v45, %v212_v40 }
 0x25b   :  { %v270_v48 = vmax.f32 %v474_v43, 0.0  ;;  %v476_v49 = vround.rtne.f32 %v262_v44 }
 0x25c   :  { %v271_v50 = vmax.f32 %v475_v46, 0.0  ;;  %v477_v51 = vround.rtne.f32 %v264_v47 }
 0x25d   :  { %v272_v52 = vmax.f32 %v476_v49, 0.0  ;;  %v274_v54 = vmin.f32 %v270_v48, 15.0  ;;  %v520_v48 = vmov 1966171168  }
 0x25e   :  { %v273_v53 = vmax.f32 %v477_v51, 0.0  ;;  %v275_v55 = vmin.f32 %v271_v50, 15.0  ;;  %v415_v49 = vunpack.c.l.s4 %v520_v48  ;;  %v417_v50 = vlaneseq }
 0x25f   :  { %v276_v2 = vmin.f32 %v272_v52, 15.0 }
 0x260   :  { %v277_v56 = vmin.f32 %v273_v53, 15.0 }
 0x261   :  { %v282_v57 = vpack.c.bf16 %v276_v2, %v274_v54  ;;  %v416_v2 = vunpack.c.0.s8 %v415_v49 }
 0x262   :  { %v283_v58 = vpack.c.bf16 %v277_v56, %v275_v55  ;;  %v418_v55 = vshrl.u32 %v417_v50, 7 }
 0x264   :  { %302 = vmatprep.subr.bf16.mxu1 %v283_v58 }
 0x265   :  { %303 = vmatpush1.bf16.msra.mxu1 %v282_v57 }
 0x268   :  { %460 = vmatmul.mubr.msk.bf16.vlgmr.msra.gmra.mrb[4].mxu1 %vm112_vm0, %v494_v59 }
 0x33b   :  { %v336_v61 = vpop.f32.mrb[4].mxu1 }
 0x33c   :  { %v337_v62 = vadd.f32 %v336_v61, %v287_v60  ;;  %v338_v63 = vpop.f32.mrb[5].mxu1 }
 0x33d   :  { %v339_v1 = vadd.f32 %v338_v63, %v287_v60  ;;  %v340_v3 = vpop.f32.mrb[6].mxu1  ;;  %v419_v60 = vsub.s32 %v416_v2, %v418_v55  ;;  %v436_v63 = vld [vmem:[#allocation2] sm:$0x3] }
 0x33e   :  { %v478_v4 = vround.rtne.f32 %v337_v62  ;;  %v341_v5 = vadd.f32 %v340_v3, %v292_v0  ;;  %v342_v6 = vpop.f32.mrb[7].mxu1 }
 0x33f   :  { %v479_v7 = vround.rtne.f32 %v339_v1  ;;  %v343_v8 = vadd.f32 %v342_v6, %v292_v0 }
 0x340   :  { %v349_v9 = vmax.f32 %v478_v4, 0.0  ;;  %v480_v10 = vround.rtne.f32 %v341_v5 }
 0x341   :  { %v350_v11 = vmax.f32 %v479_v7, 0.0  ;;  %v481_v12 = vround.rtne.f32 %v343_v8 }
 0x342   :  { %v353_v13 = vmin.f32 %v349_v9, 15.0  ;;  %v351_v14 = vmax.f32 %v480_v10, 0.0 }
 0x343   :  { %v354_v15 = vmin.f32 %v350_v11, 15.0  ;;  %v352_v16 = vmax.f32 %v481_v12, 0.0 }
 0x344   :  { %v355_v17 = vmin.f32 %v351_v14, 15.0  ;;  %v369_v21 = vmul.f32 %v362_v19, %v353_v13 }
 0x345   :  { %v356_v20 = vmin.f32 %v352_v16, 15.0  ;;  %v370_v23 = vmul.f32 %v362_v19, %v354_v15 }
 0x346   :  { %v371_v22 = vmul.f32 %v367_v18, %v355_v17 }
 0x347   :  { %v372_v24 = vmul.f32 %v367_v18, %v356_v20 }
 0x348   :  { %v373_v25 = vadd.f32 %v371_v22, %v369_v21 }
 0x349   :  { %v380_v26 = vadd.f32 %v372_v24, %v370_v23 }
 0x34a   :  { %v374_v27 = vrot.slane %v373_v25, 4 }
 0x34b   :  { %v381_v28 = vrot.slane %v380_v26, 4 }
 0x34c   :  { %v375_v29 = vadd.f32 %v374_v27, %v373_v25 }
 0x34d   :  { %v382_v30 = vadd.f32 %v381_v28, %v380_v26 }
 0x34e   :  { %v376_v31 = vrot.slane %v375_v29, 2 }
 0x34f   :  { %v383_v32 = vrot.slane %v382_v30, 2 }
 0x350   :  { %v377_v33 = vadd.f32 %v376_v31, %v375_v29 }
 0x351   :  { %v384_v34 = vadd.f32 %v383_v32, %v382_v30 }
 0x352   :  { %v378_v35 = vrot.slane %v377_v33, 1 }
 0x353   :  { %v385_v36 = vrot.slane %v384_v34, 1 }
 0x354   :  { %v379_v37 = vadd.f32 %v378_v35, %v377_v33 }
 0x355   :  { %v386_v39 = vadd.f32 %v385_v36, %v384_v34 }
 0x356   :  { %v393_v40 = vadd.f32 %v391_v38, %v379_v37 }
 0x357   :  { %v394_v41 = vadd.f32 %v391_v38, %v386_v39 }
 0x358   :  { %v482_v42 = vround.rtne.f32 %v393_v40 }
 0x359   :  { %v483_v43 = vround.rtne.f32 %v394_v41 }
 0x35a   :  { %v397_v44 = vmax.f32 %v482_v42, 0.0 }
 0x35b   :  { %v398_v45 = vmax.f32 %v483_v43, 0.0 }
 0x35c   :  { %v399_v46 = vmin.f32 %v397_v44, 15.0 }
 0x35d   :  { %v400_v47 = vmin.f32 %v398_v45, 15.0 }
 0x35e   :  { %v401_v51 = vmul.f32 0.4, %v399_v46 }
 0x35f   :  { %v402_v52 = vmul.f32 0.4, %v400_v47 }
 0x360   :  { %v484_v53 = vround.rtne.f32 %v401_v51 }
 0x361   :  { %v485_v54 = vround.rtne.f32 %v402_v52 }
 0x362   :  { %v405_v56 = vmax.f32 %v484_v53, 0.0 }
 0x363   :  { %v406_v57 = vmax.f32 %v485_v54, 0.0 }
 0x364   :  { %v407_v58 = vmin.f32 %v405_v56, 15.0 }
 0x365   :  { %v408_v59 = vmin.f32 %v406_v57, 15.0 }
 0x367   :  { %v461_v61 = vpack.c.bf16 %v408_v59, %v407_v58 }
 0x369   :  { %v420_v62 = vrot.slane %v461_v61, %v419_v60 }
 0x36b   :  { %v427_v0 = vrot.slane %v420_v62, %v419_v60 }
 0x36d   :  { %v437_v1 = vsel %vm435_vm8, %v427_v0, %v436_v63 }
 0x36e   :  { %438 = vst [vmem:[#allocation2] sm:$0x3] %v437_v1 }
 0x36f   :  { %506 = shalt.err (!%p503_p4)
}
 0x370   :  { %s507_s10 = scalar_lea.hbm %s641_s5, 32 }
 0x371   :  { %p508_p5 = scmp.ne.s32.totalorder %s641_s5, %s507_s10  ;;  %p511_p6 = scmp.lt.u32.totalorder %s507_s10, %s641_s5 }
 0x373   :  { %p513_p7 = pnand %p511_p6, %p508_p5 }
 0x375   :  { %516 = shalt.err (!%p513_p7)
}
 0x376   :  { %448 = dma.vmem_to_hbm [thread:$0]  %s446_s6, 32, %s641_s5, [#allocation3]  }
 0x377   :  { %517 = dma.done.wait [#allocation3], 32  }
 0x378   :  { %518 = vsyncadd [#allocation3], 4294967264 }
 0x379   :  { %452 = vsyncpa [#allocation3], 1 }

</bundles_post_ra>
